<compile_context>
chip_gen: v6e
topology: v6e:2x2x1
jax: 0.10.0
libtpu: 0.0.40
codegen_flags: <defaults>
</compile_context>

<pallas_src>
import math

import jax
import jax.numpy as jnp
from jax.experimental import pallas as pl
from jax.experimental.pallas import tpu as pltpu


def _cdiv(a, b):
    return -(-a // b)


def _round_up(a, b):
    return _cdiv(a, b) * b


def _min_sublane(dtype) -> int:
    # Minimum second-to-last tile dim for this dtype (sublane packing):
    # f32 -> 8, bf16/f16 -> 16, int8/fp8 -> 32.
    itemsize = jnp.dtype(dtype).itemsize
    return max(8, 32 // itemsize)


def _chip_params():
    """Returns (vmem_capacity_bytes, tensorcores_per_chip) with safe fallbacks."""
    vmem_cap = 128 << 20
    num_cores = 1
    try:
        info = pltpu.get_tpu_info()
        vmem_cap = int(getattr(info, "vmem_capacity_bytes", vmem_cap))
        nc = getattr(info, "num_cores", None) or getattr(
            info, "tensorcores_per_chip", None)
        if nc:
            num_cores = int(nc)
    except Exception:
        pass
    if num_cores <= 1 and vmem_cap <= (64 << 20):
        # v7x heuristic: 64 MiB VMEM per TensorCore, 2 TensorCores per chip.
        num_cores = 2
    return vmem_cap, num_cores


def _nonorm_kernel(x_ref, w_ref, b_ref, o_ref):
    # Compute in f32 (free — the op is HBM-bound), cast on store.
    # Ragged tails: Pallas pads the last input block and clips the output
    # store; fine for a pure elementwise op (do NOT add a reduction here
    # without masking the padded rows/lanes).
    x = x_ref[...].astype(jnp.float32)
    o_ref[...] = (x * w_ref[...] + b_ref[...]).astype(o_ref.dtype)


def nonorm(x, weight, bias, *, min_pallas_bytes=1 << 20):
    """x: (..., H); weight, bias: (H,). Returns x * weight + bias."""
    out_dtype = jnp.result_type(x.dtype, weight.dtype, bias.dtype)

    if x.size == 0:
        return jnp.zeros(x.shape, out_dtype)

    itemsize = jnp.dtype(x.dtype).itemsize
    in_bytes = x.size * itemsize
    if in_bytes < min_pallas_bytes:
        # Tiny input: fixed pallas_call launch cost dominates; let XLA fuse.
        return (x * weight + bias).astype(out_dtype)

    orig_shape = x.shape
    H = orig_shape[-1]
    R = x.size // H

    out_itemsize = jnp.dtype(out_dtype).itemsize
    big_item = max(itemsize, out_itemsize)

    # Params are tiny; keep them in f32 for the in-kernel f32 compute.
    w32 = weight.astype(jnp.float32)
    b32 = bias.astype(jnp.float32)

    # Lane-dense folding: reshape the flat buffer so the lane (last) dim is a
    # multiple of 128 -> full-width stores instead of masked vst.msk.
    # Generalized via L = lcm(H, 128); fold k = L // H rows together.
    Rp, Hp = R, H
    if H % 128 != 0:
        L = math.lcm(H, 128)
        k = L // H
        if R % k == 0:
            Rp, Hp = R // k, L
            w32 = jnp.tile(w32, k)
            b32 = jnp.tile(b32, k)

    # NOTE: reshape is metadata-only for a contiguous x; a transposed/strided
    # input triggers a single XLA copy outside the kernel (numerically fine).
    x2d = x.reshape(Rp, Hp)
    w2d = w32.reshape(1, Hp)
    b2d = b32.reshape(1, Hp)

    vmem_cap, num_cores = _chip_params()
    # Chip-aware block target: ~8 MiB on v7x (64 MiB VMEM/TC), ~16 MiB on
    # v5e/v6e (128 MiB). Sized in the *wider* of in/out dtypes so the total
    # double-buffered footprint stays around 4x the target.
    target_block_bytes = (8 << 20) if vmem_cap <= (64 << 20) else (16 << 20)

    sub = max(_min_sublane(x.dtype), _min_sublane(out_dtype))

    # Lane tiling (multiples of 128) for very wide feature dims, so even a
    # minimal `sub`-row block never exceeds the VMEM budget.
    max_lane_tile = max(128, (target_block_bytes // (sub * big_item)) // 128 * 128)
    lane_tile = Hp if Hp <= max_lane_tile else max_lane_tile

    # Row tiling: as large as the target allows, sublane-aligned. On multi-TC
    # chips (v7x) round the step count to a multiple of the core count with
    # near-equal blocks instead of one big block + a tiny ragged tail.
    bytes_per_row = lane_tile * big_item
    if Rp <= sub:
        row_tile = Rp
    else:
        ideal_rows = max(sub, (target_block_bytes // bytes_per_row) // sub * sub)
        if num_cores > 1:
            steps = _round_up(max(_cdiv(Rp, ideal_rows), num_cores), num_cores)
            row_tile = max(sub, _round_up(_cdiv(Rp, steps), sub))
        else:
            row_tile = ideal_rows
        if row_tile >= Rp:
            row_tile = Rp  # full extent — satisfies the "full array dim" rule

    grid = (_cdiv(Rp, row_tile), _cdiv(Hp, lane_tile))

    # Double-buffered in/out blocks + resident params + headroom, capped at
    # 75% of this chip's physical VMEM (48 MiB on v7x, 96 MiB on v5e/v6e).
    x_block = row_tile * lane_tile * itemsize
    o_block = row_tile * lane_tile * out_itemsize
    needed = 2 * (x_block + o_block) + 4 * lane_tile * 4 + (2 << 20)
    vmem_limit = int(min(max(needed, 16 << 20), (vmem_cap * 3) // 4))

    out = pl.pallas_call(
        _nonorm_kernel,
        out_shape=jax.ShapeDtypeStruct((Rp, Hp), out_dtype),
        grid_spec=pltpu.PrefetchScalarGridSpec(
            num_scalar_prefetch=0,
            grid=grid,
            in_specs=[
                pl.BlockSpec((row_tile, lane_tile), lambda i, j: (i, j)),
                pl.BlockSpec((1, lane_tile), lambda i, j: (0, j)),  # weight
                pl.BlockSpec((1, lane_tile), lambda i, j: (0, j)),  # bias
            ],
            out_specs=pl.BlockSpec((row_tile, lane_tile), lambda i, j: (i, j)),
        ),
        compiler_params=pltpu.CompilerParams(
            dimension_semantics=("parallel", "parallel"),
            vmem_limit_bytes=vmem_limit,
        ),
    )(x2d, w2d, b2d)

    return out.reshape(orig_shape)


if __name__ == "__main__":
    key = jax.random.PRNGKey(0)
    ks = jax.random.split(key, 9)

    # --- MobileBERT-ish tiny shape: (batch, seq, hidden) = (2, 8, 32) -------
    x = jax.random.normal(ks[0], (2, 8, 32), dtype=jnp.float32)
    w = jax.random.normal(ks[1], (32,), dtype=jnp.float32)
    b = jax.random.normal(ks[2], (32,), dtype=jnp.float32)
    ref = x * w + b

    # Default path: tiny input -> pure-JAX bypass (launch cost would dominate).
    out = jax.block_until_ready(nonorm(x, w, b))
    assert out.shape == x.shape and out.dtype == ref.dtype
    assert jnp.allclose(out, ref, atol=1e-6, rtol=1e-6)

    # Same tiny shape, forced through the Pallas kernel (lcm fold: 32 -> 128).
    out_p = jax.block_until_ready(nonorm(x, w, b, min_pallas_bytes=0))
    assert jnp.allclose(out_p, ref, atol=1e-6, rtol=1e-6)

    # Non-divisor feature size (H=96 folds to 384 lane-dense lanes).
    x3 = jax.random.normal(ks[3], (2, 16, 96), dtype=jnp.float32)
    w3 = jax.random.normal(ks[4], (96,), dtype=jnp.float32)
    b3 = jax.random.normal(ks[5], (96,), dtype=jnp.float32)
    out3 = jax.block_until_ready(nonorm(x3, w3, b3, min_pallas_bytes=0))
    assert jnp.allclose(out3, x3 * w3 + b3, atol=1e-6, rtol=1e-6)

    # bf16 activations with f32 params: PyTorch-style promotion -> f32 output.
    xb = jax.random.normal(ks[6], (4, 64, 512), dtype=jnp.float32).astype(jnp.bfloat16)
    wb = jax.random.normal(ks[7], (512,), dtype=jnp.float32)
    bb = jax.random.normal(ks[8], (512,), dtype=jnp.float32)
    outb = jax.block_until_ready(nonorm(xb, wb, bb, min_pallas_bytes=0))
    refb = xb.astype(jnp.float32) * wb + bb
    assert outb.shape == xb.shape and outb.dtype == jnp.float32
    assert jnp.allclose(outb, refb, atol=1e-5, rtol=1e-5)

    print("KERNEL_OK")
</pallas_src>

<mosaic_0001>
module attributes {stable_mosaic.version = 11 : i64} {
  func.func @_nonorm_kernel(%arg0: i32, %arg1: i32, %arg2: memref<4x128xf32, #tpu.memory_space<vmem>>, %arg3: memref<1x128xf32, #tpu.memory_space<vmem>>, %arg4: memref<1x128xf32, #tpu.memory_space<vmem>>, %arg5: memref<4x128xf32, #tpu.memory_space<vmem>>) attributes {dimension_semantics = [#tpu.dimension_semantics<parallel>, #tpu.dimension_semantics<parallel>], iteration_bounds = array<i64: 1, 1>, scalar_prefetch = 0 : i64, scratch_operands = 0 : i64, tpu.core_type = #tpu.core_type<tc>, window_params = [{transform_indices = @transform_0, window_bounds = array<i64: 4, 128>}, {transform_indices = @transform_1, window_bounds = array<i64: 1, 128>}, {transform_indices = @transform_2, window_bounds = array<i64: 1, 128>}, {transform_indices = @transform_3, window_bounds = array<i64: 4, 128>}]} {
    %c0 = arith.constant 0 : index
    %c0_0 = arith.constant 0 : index
    %0 = vector.load %arg2[%c0, %c0_0] : memref<4x128xf32, #tpu.memory_space<vmem>>, vector<4x128xf32>
    %c0_1 = arith.constant 0 : index
    %c0_2 = arith.constant 0 : index
    %1 = vector.load %arg3[%c0_1, %c0_2] : memref<1x128xf32, #tpu.memory_space<vmem>>, vector<1x128xf32>
    %2 = vector.broadcast %1 : vector<1x128xf32> to vector<4x128xf32>
    %3 = arith.mulf %0, %2 : vector<4x128xf32>
    %c0_3 = arith.constant 0 : index
    %c0_4 = arith.constant 0 : index
    %4 = vector.load %arg4[%c0_3, %c0_4] : memref<1x128xf32, #tpu.memory_space<vmem>>, vector<1x128xf32>
    %5 = vector.broadcast %4 : vector<1x128xf32> to vector<4x128xf32>
    %6 = arith.addf %3, %5 : vector<4x128xf32>
    %c0_5 = arith.constant 0 : index
    %c0_6 = arith.constant 0 : index
    %7 = vector.load %arg5[%c0_5, %c0_6] : memref<4x128xf32, #tpu.memory_space<vmem>>, vector<4x128xf32>
    tpu.vector_store %arg5[%c0_5, %c0_6], %6 {strides = array<i32>} : memref<4x128xf32, #tpu.memory_space<vmem>>, vector<4x128xf32>,
    return
  }
  func.func @transform_0(%arg0: i32, %arg1: i32) -> (i32, i32) {
    %c0_i32 = arith.constant 0 : i32
    return %arg0, %arg1 : i32, i32
  }
  func.func @transform_1(%arg0: i32, %arg1: i32) -> (i32, i32) {
    %c0_i32 = arith.constant 0 : i32
    %c0_i32_0 = arith.constant 0 : i32
    return %c0_i32, %arg1 : i32, i32
  }
  func.func @transform_2(%arg0: i32, %arg1: i32) -> (i32, i32) {
    %c0_i32 = arith.constant 0 : i32
    %c0_i32_0 = arith.constant 0 : i32
    return %c0_i32, %arg1 : i32, i32
  }
  func.func @transform_3(%arg0: i32, %arg1: i32) -> (i32, i32) {
    %c0_i32 = arith.constant 0 : i32
    return %arg0, %arg1 : i32, i32
  }
}

</mosaic_0001>

<bundles_post_ra>
// kernel: tpu_custom_call.1
= control target key start
LH: loop header
LB: loop body
LE: loop exit
PB: predicated region body
PF: predicated region fallthrough
CT: control target
= control target key end

     0   :  { %8 = vsyncpa [#allocation3], 0  ;;  %s142_s0 = inlined_call_operand.hbm [shape: f32[4,128], index: 0, kind: input, shape index: {}]   ;;  %s143_s1 = inlined_call_operand.vmem [shape: f32[1,128], index: 1, kind: input, shape index: {}]   ;;  %s144_s2 = inlined_call_operand.vmem [shape: f32[1,128], index: 2, kind: input, shape index: {}]   ;;  %s145_s3 = inlined_call_operand.hbm [shape: f32[4,128], index: 3, kind: output, shape index: {}]  }
   0x1   :  { %9 = vsyncpa [#allocation4], 0  ;;  %s108_s12 = smov [#allocation2]  }
   0x2   :  { %s16_s13 = sshll.u32 %s108_s12, 4  ;;  %s17_s13 = int_to_ptr.vmem [resolvable:$true] %s16_s13 }
   0x3   :  { %s72_s14 = scalar_lea.vmem %s17_s13, 64  ;;  %p77_p1 = scmp.lt.s32.totalorder %s17_s13, %s17_s13 }
   0x4   :  { %p73_p0 = scmp.ne.s32.totalorder %s17_s13, %s72_s14  ;;  %p78_p2 = scmp.lt.s32.totalorder %s72_s14, %s72_s14 }
   0x6   :  { %p79_p3 = por %p78_p2, %p77_p1 }
   0x8   :  { %p80_p4 = pnand %p79_p3, %p73_p0 }
   0xa   :  { %83 = shalt.err (!%p80_p4)
}
   0xb   :  { %19 = dma.hbm_to_vmem [thread:$0]  %s142_s0, 64, %s17_s13, [#allocation3]  }
   0xc   :  { %104 = dma.done.wait [#allocation3], 64  }
   0xd   :  { %105 = vsyncadd [#allocation3], 4294967232  ;;  %s109_s17 = smov [#allocation5]   ;;  %v27_v0 = vld [vmem:[#allocation2] sm:$0xf] }
   0xe   :  { %s51_s18 = sshll.u32 %s109_s17, 4  ;;  %v60_v1 = vld [vmem:[%s143_s1] ss:$0 sm:$0xff]  ;;  %s52_s18 = int_to_ptr.vmem [resolvable:$true] %s51_s18 }
   0xf   :  { %v61_v2 = vld [vmem:[%s144_s2] ss:$0 sm:$0xff]  ;;  %v35_v3 = vmul.f32 %v60_v1, %v27_v0  ;;  %s84_s23 = scalar_lea.vmem %s52_s18, 64  ;;  %p89_p6 = scmp.lt.s32.totalorder %s52_s18, %s52_s18 }
  0x10   :  { %p85_p5 = scmp.ne.s32.totalorder %s52_s18, %s84_s23  ;;  %p90_p7 = scmp.lt.s32.totalorder %s84_s23, %s84_s23 }
  0x11   :  { %v43_v4 = vadd.f32 %v61_v2, %v35_v3 }
  0x12   :  { %p91_p8 = por %p90_p7, %p89_p6 }
  0x13   :  { %44 = vst [vmem:[#allocation5] sm:$0xf] %v43_v4 }
  0x14   :  { %p92_p9 = pnand %p91_p8, %p85_p5 }
  0x16   :  { %95 = shalt.err (!%p92_p9)
}
  0x17   :  { %54 = dma.vmem_to_hbm [thread:$0]  %s52_s18, 64, %s145_s3, [#allocation4]  }
  0x18   :  { %106 = dma.done.wait [#allocation4], 64  }
  0x19   :  { %107 = vsyncadd [#allocation4], 4294967232 }
  0x1a   :  { %58 = vsyncpa [#allocation3], 1 }
  0x1b   :  { %59 = vsyncpa [#allocation4], 1 }

</bundles_post_ra>
